<compile_context>
chip_gen: v5e
topology: v5e:2x2
jax: 0.10.0
libtpu: 0.0.40
codegen_flags: <defaults>
</compile_context>

<pallas_src>
import jax
import jax.numpy as jnp
from jax.experimental import pallas as pl
from jax.experimental.pallas import tpu as pltpu


def _round_up(x: int, m: int) -> int:
    return ((x + m - 1) // m) * m


def _mlp_deep_kernel(x_ref, w1_ref, b1_ref, wh_ref, bh_ref, wo_ref, bo_ref,
                     o_ref, acc_ref):
    k = pl.program_id(1)

    @pl.when(k == 0)
    def _init():
        # Fold b1 into the accumulator init (saves a separate (TB, Hp) VPU add).
        acc_ref[...] = jnp.broadcast_to(b1_ref[...], acc_ref.shape)

    # Streamed partial product of the first (large) layer: (TB, TD) @ (TD, Hp).
    acc_ref[...] += jnp.dot(x_ref[...], w1_ref[...],
                            preferred_element_type=jnp.float32)

    @pl.when(k == pl.num_programs(1) - 1)
    def _epilogue():
        h = jnp.maximum(acc_ref[...], 0.0)                  # ReLU after layer 0
        num_hidden = wh_ref.shape[0]                        # static unroll
        for l in range(num_hidden):
            h = jnp.dot(h.astype(wh_ref.dtype), wh_ref[l],
                        preferred_element_type=jnp.float32) + bh_ref[l]
            h = jnp.maximum(h, 0.0)
        logits = jnp.dot(h.astype(wo_ref.dtype), wo_ref[...],
                         preferred_element_type=jnp.float32) + bo_ref[...]
        o_ref[...] = logits.astype(o_ref.dtype)


def mlp_classifier_deep_forward(x, w1, b1, w_hidden, b_hidden, w_out, b_out):
    """x: (B, 3, H, W) float32 -> logits (B, num_classes) float32."""
    B = x.shape[0]
    D = x.shape[1] * x.shape[2] * x.shape[3]
    x_flat = x.reshape(B, D)                 # same flatten order as torch .view on NCHW

    H = w1.shape[1]                          # layer_size
    L = w_hidden.shape[0]                    # num_layers (hidden Linear+ReLU blocks)
    C = w_out.shape[1]                       # num_classes

    # Lane-dense padded sizes (multiples of 128 on the lane axis).
    Hp = _round_up(max(H, 128), 128)
    Cp = _round_up(max(C, 128), 128)

    # Batch tile: multiple of 16 (bf16 sublane packing); shard across cores when big.
    TB = 128 if B >= 128 else _round_up(B, 16)
    Bp = _round_up(B, TB)

    # K-tile of the D reduction (streamed, double-buffered x / W1 reads).
    TD = min(1024, _round_up(D, 128))
    Dp = _round_up(D, TD)

    nb = Bp // TB
    nk = Dp // TD

    # Pad + cast: bf16 activations/weights, f32 biases (accumulation stays f32).
    xp = jnp.zeros((Bp, Dp), jnp.bfloat16).at[:B, :D].set(x_flat.astype(jnp.bfloat16))
    w1p = jnp.zeros((Dp, Hp), jnp.bfloat16).at[:D, :H].set(w1.astype(jnp.bfloat16))
    b1p = jnp.zeros((1, Hp), jnp.float32).at[0, :H].set(b1.astype(jnp.float32))

    if L > 0:
        whp = jnp.zeros((L, Hp, Hp), jnp.bfloat16).at[:, :H, :H].set(
            w_hidden.astype(jnp.bfloat16))
        bhp = jnp.zeros((L, 1, Hp), jnp.float32).at[:, 0, :H].set(
            b_hidden.astype(jnp.float32))
        Lp = L
    else:
        # Degenerate num_layers=0: identity hidden layer is a no-op since the
        # incoming activations are already non-negative (post-ReLU).
        whp = jnp.eye(Hp, dtype=jnp.bfloat16)[None]
        bhp = jnp.zeros((1, 1, Hp), jnp.float32)
        Lp = 1

    wop = jnp.zeros((Hp, Cp), jnp.bfloat16).at[:H, :C].set(w_out.astype(jnp.bfloat16))
    bop = jnp.zeros((1, Cp), jnp.float32).at[0, :C].set(b_out.astype(jnp.float32))

    # Explicit VMEM budget: double-buffered streamed inputs + resident weights
    # + accumulator, with 2x headroom.  Keeps v7x (64 MiB phys / 32 MiB scoped
    # default) and v5e (16 MiB scoped default) honest.
    bf2, f4 = 2, 4
    vmem_est = (
        2 * TB * TD * bf2            # x tile (double-buffered)
        + 2 * TD * Hp * bf2          # W1 tile (double-buffered, dominant stream)
        + 2 * Hp * f4                # b1
        + 2 * Lp * Hp * Hp * bf2     # resident hidden weights
        + 2 * Lp * Hp * f4           # resident hidden biases
        + 2 * Hp * Cp * bf2          # resident output weight
        + 2 * Cp * f4                # output bias
        + 2 * TB * Cp * f4           # output tile
        + TB * Hp * f4               # accumulator scratch
    )
    vmem_limit = int(min(max(2 * vmem_est, 8 * 1024 * 1024), 100 * 1024 * 1024))

    flops = 2 * Bp * (Dp * Hp + Lp * Hp * Hp + Hp * Cp)
    bytes_accessed = (
        xp.size * bf2 + w1p.size * bf2 + whp.size * bf2 + wop.size * bf2
        + b1p.size * f4 + bhp.size * f4 + bop.size * f4 + Bp * Cp * f4
    )

    out = pl.pallas_call(
        _mlp_deep_kernel,
        out_shape=jax.ShapeDtypeStruct((Bp, Cp), jnp.float32),
        grid_spec=pltpu.PrefetchScalarGridSpec(
            num_scalar_prefetch=0,
            grid=(nb, nk),
            in_specs=[
                pl.BlockSpec((TB, TD), lambda b, k: (b, k)),        # x: streamed
                pl.BlockSpec((TD, Hp), lambda b, k: (k, 0)),        # W1: streamed over k
                pl.BlockSpec((1, Hp), lambda b, k: (0, 0)),         # b1: resident
                pl.BlockSpec((Lp, Hp, Hp), lambda b, k: (0, 0, 0)), # hidden W: resident
                pl.BlockSpec((Lp, 1, Hp), lambda b, k: (0, 0, 0)),  # hidden b: resident
                pl.BlockSpec((Hp, Cp), lambda b, k: (0, 0)),        # W_out: resident
                pl.BlockSpec((1, Cp), lambda b, k: (0, 0)),         # b_out: resident
            ],
            out_specs=pl.BlockSpec((TB, Cp), lambda b, k: (b, 0)),
            scratch_shapes=[pltpu.VMEM((TB, Hp), jnp.float32)],
        ),
        compiler_params=pltpu.CompilerParams(
            dimension_semantics=("parallel", "arbitrary"),
            vmem_limit_bytes=vmem_limit,
        ),
        cost_estimate=pl.CostEstimate(
            flops=flops, transcendentals=0, bytes_accessed=bytes_accessed),
    )(xp, w1p, b1p, whp, bhp, wop, bop)

    return out[:B, :C]


def init_params(key, h, w, layer_size, num_classes, num_layers):
    """Deterministic PyTorch-Linear-style init (uniform in +/- 1/sqrt(fan_in))."""
    d_in = 3 * h * w
    keys = jax.random.split(key, 4 + 2 * num_layers)
    bound_in = 1.0 / jnp.sqrt(d_in)
    bound_h = 1.0 / jnp.sqrt(layer_size)
    w1 = jax.random.uniform(keys[0], (d_in, layer_size), jnp.float32, -bound_in, bound_in)
    b1 = jax.random.uniform(keys[1], (layer_size,), jnp.float32, -bound_in, bound_in)
    whs, bhs = [], []
    for l in range(num_layers):
        whs.append(jax.random.uniform(keys[2 + 2 * l], (layer_size, layer_size),
                                      jnp.float32, -bound_h, bound_h))
        bhs.append(jax.random.uniform(keys[3 + 2 * l], (layer_size,),
                                      jnp.float32, -bound_h, bound_h))
    wo = jax.random.uniform(keys[2 + 2 * num_layers], (layer_size, num_classes),
                            jnp.float32, -bound_h, bound_h)
    bo = jax.random.uniform(keys[3 + 2 * num_layers], (num_classes,),
                            jnp.float32, -bound_h, bound_h)
    return w1, b1, jnp.stack(whs), jnp.stack(bhs), wo, bo


if __name__ == "__main__":
    # Small shapes consistent with the module: (b, 3, H, W)
    B, H_IMG, W_IMG = 2, 16, 16
    LAYER_SIZE, NUM_CLASSES, NUM_LAYERS = 32, 6, 3

    key = jax.random.PRNGKey(0)
    kx, kp = jax.random.split(key)
    x = jax.random.normal(kx, (B, 3, H_IMG, W_IMG), dtype=jnp.float32)
    w1, b1, wh, bh, wo, bo = init_params(kp, H_IMG, W_IMG, LAYER_SIZE,
                                         NUM_CLASSES, NUM_LAYERS)

    logits = mlp_classifier_deep_forward(x, w1, b1, wh, bh, wo, bo)
    logits = jax.block_until_ready(logits)

    # Pure-JAX reference with the same bf16 inputs / f32 accumulation.
    xf = x.reshape(B, -1).astype(jnp.bfloat16)
    h = jnp.dot(xf, w1.astype(jnp.bfloat16), preferred_element_type=jnp.float32) + b1
    h = jnp.maximum(h, 0.0)
    for l in range(NUM_LAYERS):
        h = jnp.dot(h.astype(jnp.bfloat16), wh[l].astype(jnp.bfloat16),
                    preferred_element_type=jnp.float32) + bh[l]
        h = jnp.maximum(h, 0.0)
    ref = jnp.dot(h.astype(jnp.bfloat16), wo.astype(jnp.bfloat16),
                  preferred_element_type=jnp.float32) + bo

    assert logits.shape == (B, NUM_CLASSES)
    assert jnp.allclose(logits, ref, atol=2e-3, rtol=2e-3), \
        float(jnp.max(jnp.abs(logits - ref)))

    print("KERNEL_OK")
</pallas_src>

<mosaic_0001>
module attributes {stable_mosaic.version = 11 : i64} {
  func.func @_mlp_deep_kernel(%arg0: i32, %arg1: i32, %arg2: memref<16x768xbf16, #tpu.memory_space<vmem>>, %arg3: memref<768x128xbf16, #tpu.memory_space<vmem>>, %arg4: memref<1x128xf32, #tpu.memory_space<vmem>>, %arg5: memref<3x128x128xbf16, #tpu.memory_space<vmem>>, %arg6: memref<3x1x128xf32, #tpu.memory_space<vmem>>, %arg7: memref<128x128xbf16, #tpu.memory_space<vmem>>, %arg8: memref<1x128xf32, #tpu.memory_space<vmem>>, %arg9: memref<16x128xf32, #tpu.memory_space<vmem>>, %arg10: memref<16x128xf32, #tpu.memory_space<vmem>>) attributes {dimension_semantics = [#tpu.dimension_semantics<parallel>, #tpu.dimension_semantics<arbitrary>], iteration_bounds = array<i64: 1, 1>, scalar_prefetch = 0 : i64, scratch_operands = 1 : i64, tpu.core_type = #tpu.core_type<tc>, window_params = [{transform_indices = @transform_0, window_bounds = array<i64: 16, 768>}, {transform_indices = @transform_1, window_bounds = array<i64: 768, 128>}, {pipeline_mode = #tpu.pipeline_mode<synchronous>, transform_indices = @transform_2, window_bounds = array<i64: 1, 128>}, {pipeline_mode = #tpu.pipeline_mode<synchronous>, transform_indices = @transform_3, window_bounds = array<i64: 3, 128, 128>}, {pipeline_mode = #tpu.pipeline_mode<synchronous>, transform_indices = @transform_4, window_bounds = array<i64: 3, 1, 128>}, {pipeline_mode = #tpu.pipeline_mode<synchronous>, transform_indices = @transform_5, window_bounds = array<i64: 128, 128>}, {pipeline_mode = #tpu.pipeline_mode<synchronous>, transform_indices = @transform_6, window_bounds = array<i64: 1, 128>}, {transform_indices = @transform_7, window_bounds = array<i64: 16, 128>}]} {
    %c0_i32 = arith.constant 0 : i32
    %0 = arith.cmpi eq, %arg1, %c0_i32 : i32
    %1 = arith.extui %0 : i1 to i32
    %c0_i32_0 = arith.constant 0 : i32
    %2 = arith.cmpi ne, %1, %c0_i32_0 : i32
    scf.if %2 {
      %c0_10 = arith.constant 0 : index
      %c0_11 = arith.constant 0 : index
      %12 = vector.load %arg4[%c0_10, %c0_11] : memref<1x128xf32, #tpu.memory_space<vmem>>, vector<1x128xf32>
      %13 = vector.shape_cast %12 : vector<1x128xf32> to vector<1x128xf32>
      %14 = vector.broadcast %13 : vector<1x128xf32> to vector<16x128xf32>
      %c0_12 = arith.constant 0 : index
      %c0_13 = arith.constant 0 : index
      %15 = vector.load %arg10[%c0_12, %c0_13] : memref<16x128xf32, #tpu.memory_space<vmem>>, vector<16x128xf32>
      tpu.vector_store %arg10[%c0_12, %c0_13], %14 {strides = array<i32>} : memref<16x128xf32, #tpu.memory_space<vmem>>, vector<16x128xf32>,
    } else {
    }
    %c0 = arith.constant 0 : index
    %c0_1 = arith.constant 0 : index
    %3 = vector.load %arg10[%c0, %c0_1] : memref<16x128xf32, #tpu.memory_space<vmem>>, vector<16x128xf32>
    %c0_2 = arith.constant 0 : index
    %c0_3 = arith.constant 0 : index
    %4 = vector.load %arg2[%c0_2, %c0_3] : memref<16x768xbf16, #tpu.memory_space<vmem>>, vector<16x768xbf16>
    %c0_4 = arith.constant 0 : index
    %c0_5 = arith.constant 0 : index
    %5 = vector.load %arg3[%c0_4, %c0_5] : memref<768x128xbf16, #tpu.memory_space<vmem>>, vector<768x128xbf16>
    %cst = arith.constant dense<0.000000e+00> : vector<16x128xf32>
    %6 = tpu.matmul %4, %5, %cst {dimension_numbers = #tpu.dot_dimension_numbers<[1], [0], [0], [1], [0, 0, 1, 1], [], []>} : vector<16x768xbf16>, vector<768x128xbf16>, vector<16x128xf32> -> vector<16x128xf32>
    %7 = arith.addf %3, %6 : vector<16x128xf32>
    %c0_6 = arith.constant 0 : index
    %c0_7 = arith.constant 0 : index
    %8 = vector.load %arg10[%c0_6, %c0_7] : memref<16x128xf32, #tpu.memory_space<vmem>>, vector<16x128xf32>
    tpu.vector_store %arg10[%c0_6, %c0_7], %7 {strides = array<i32>} : memref<16x128xf32, #tpu.memory_space<vmem>>, vector<16x128xf32>,
    %c0_i32_8 = arith.constant 0 : i32
    %9 = arith.cmpi eq, %arg1, %c0_i32_8 : i32
    %10 = arith.extui %9 : i1 to i32
    %c0_i32_9 = arith.constant 0 : i32
    %11 = arith.cmpi ne, %10, %c0_i32_9 : i32
    scf.if %11 {
      %c0_10 = arith.constant 0 : index
      %c0_11 = arith.constant 0 : index
      %12 = vector.load %arg10[%c0_10, %c0_11] : memref<16x128xf32, #tpu.memory_space<vmem>>, vector<16x128xf32>
      %cst_12 = arith.constant 0.000000e+00 : f32
      %13 = vector.broadcast %cst_12 : f32 to vector<16x128xf32>
      %14 = arith.maximumf %12, %13 : vector<16x128xf32>
      %15 = arith.truncf %14 : vector<16x128xf32> to vector<16x128xbf16>
      %c0_13 = arith.constant 0 : index
      %c0_14 = arith.constant 0 : index
      %c0_15 = arith.constant 0 : index
      %16 = vector.load %arg5[%c0_13, %c0_14, %c0_15] : memref<3x128x128xbf16, #tpu.memory_space<vmem>>, vector<1x128x128xbf16>
      %17 = vector.shape_cast %16 : vector<1x128x128xbf16> to vector<128x128xbf16>
      %cst_16 = arith.constant dense<0.000000e+00> : vector<16x128xf32>
      %18 = tpu.matmul %15, %17, %cst_16 {dimension_numbers = #tpu.dot_dimension_numbers<[1], [0], [0], [1], [0, 0, 1, 1], [], []>} : vector<16x128xbf16>, vector<128x128xbf16>, vector<16x128xf32> -> vector<16x128xf32>
      %c0_17 = arith.constant 0 : index
      %c0_18 = arith.constant 0 : index
      %c0_19 = arith.constant 0 : index
      %19 = vector.load %arg6[%c0_17, %c0_18, %c0_19] : memref<3x1x128xf32, #tpu.memory_space<vmem>>, vector<1x1x128xf32>
      %20 = vector.shape_cast %19 : vector<1x1x128xf32> to vector<1x128xf32>
      %21 = vector.broadcast %20 : vector<1x128xf32> to vector<16x128xf32>
      %22 = arith.addf %18, %21 : vector<16x128xf32>
      %cst_20 = arith.constant 0.000000e+00 : f32
      %23 = vector.broadcast %cst_20 : f32 to vector<16x128xf32>
      %24 = arith.maximumf %22, %23 : vector<16x128xf32>
      %25 = arith.truncf %24 : vector<16x128xf32> to vector<16x128xbf16>
      %c1 = arith.constant 1 : index
      %c0_21 = arith.constant 0 : index
      %c0_22 = arith.constant 0 : index
      %26 = vector.load %arg5[%c1, %c0_21, %c0_22] : memref<3x128x128xbf16, #tpu.memory_space<vmem>>, vector<1x128x128xbf16>
      %27 = vector.shape_cast %26 : vector<1x128x128xbf16> to vector<128x128xbf16>
      %cst_23 = arith.constant dense<0.000000e+00> : vector<16x128xf32>
      %28 = tpu.matmul %25, %27, %cst_23 {dimension_numbers = #tpu.dot_dimension_numbers<[1], [0], [0], [1], [0, 0, 1, 1], [], []>} : vector<16x128xbf16>, vector<128x128xbf16>, vector<16x128xf32> -> vector<16x128xf32>
      %c1_24 = arith.constant 1 : index
      %c0_25 = arith.constant 0 : index
      %c0_26 = arith.constant 0 : index
      %29 = vector.load %arg6[%c1_24, %c0_25, %c0_26] : memref<3x1x128xf32, #tpu.memory_space<vmem>>, vector<1x1x128xf32>
      %30 = vector.shape_cast %29 : vector<1x1x128xf32> to vector<1x128xf32>
      %31 = vector.broadcast %30 : vector<1x128xf32> to vector<16x128xf32>
      %32 = arith.addf %28, %31 : vector<16x128xf32>
      %cst_27 = arith.constant 0.000000e+00 : f32
      %33 = vector.broadcast %cst_27 : f32 to vector<16x128xf32>
      %34 = arith.maximumf %32, %33 : vector<16x128xf32>
      %35 = arith.truncf %34 : vector<16x128xf32> to vector<16x128xbf16>
      %c2 = arith.constant 2 : index
      %c0_28 = arith.constant 0 : index
      %c0_29 = arith.constant 0 : index
      %36 = vector.load %arg5[%c2, %c0_28, %c0_29] : memref<3x128x128xbf16, #tpu.memory_space<vmem>>, vector<1x128x128xbf16>
      %37 = vector.shape_cast %36 : vector<1x128x128xbf16> to vector<128x128xbf16>
      %cst_30 = arith.constant dense<0.000000e+00> : vector<16x128xf32>
      %38 = tpu.matmul %35, %37, %cst_30 {dimension_numbers = #tpu.dot_dimension_numbers<[1], [0], [0], [1], [0, 0, 1, 1], [], []>} : vector<16x128xbf16>, vector<128x128xbf16>, vector<16x128xf32> -> vector<16x128xf32>
      %c2_31 = arith.constant 2 : index
      %c0_32 = arith.constant 0 : index
      %c0_33 = arith.constant 0 : index
      %39 = vector.load %arg6[%c2_31, %c0_32, %c0_33] : memref<3x1x128xf32, #tpu.memory_space<vmem>>, vector<1x1x128xf32>
      %40 = vector.shape_cast %39 : vector<1x1x128xf32> to vector<1x128xf32>
      %41 = vector.broadcast %40 : vector<1x128xf32> to vector<16x128xf32>
      %42 = arith.addf %38, %41 : vector<16x128xf32>
      %cst_34 = arith.constant 0.000000e+00 : f32
      %43 = vector.broadcast %cst_34 : f32 to vector<16x128xf32>
      %44 = arith.maximumf %42, %43 : vector<16x128xf32>
      %45 = arith.truncf %44 : vector<16x128xf32> to vector<16x128xbf16>
      %c0_35 = arith.constant 0 : index
      %c0_36 = arith.constant 0 : index
      %46 = vector.load %arg7[%c0_35, %c0_36] : memref<128x128xbf16, #tpu.memory_space<vmem>>, vector<128x128xbf16>
      %cst_37 = arith.constant dense<0.000000e+00> : vector<16x128xf32>
      %47 = tpu.matmul %45, %46, %cst_37 {dimension_numbers = #tpu.dot_dimension_numbers<[1], [0], [0], [1], [0, 0, 1, 1], [], []>} : vector<16x128xbf16>, vector<128x128xbf16>, vector<16x128xf32> -> vector<16x128xf32>
      %c0_38 = arith.constant 0 : index
      %c0_39 = arith.constant 0 : index
      %48 = vector.load %arg8[%c0_38, %c0_39] : memref<1x128xf32, #tpu.memory_space<vmem>>, vector<1x128xf32>
      %49 = vector.broadcast %48 : vector<1x128xf32> to vector<16x128xf32>
      %50 = arith.addf %47, %49 : vector<16x128xf32>
      %c0_40 = arith.constant 0 : index
      %c0_41 = arith.constant 0 : index
      %51 = vector.load %arg9[%c0_40, %c0_41] : memref<16x128xf32, #tpu.memory_space<vmem>>, vector<16x128xf32>
      tpu.vector_store %arg9[%c0_40, %c0_41], %50 {strides = array<i32>} : memref<16x128xf32, #tpu.memory_space<vmem>>, vector<16x128xf32>,
    } else {
    }
    return
  }
  func.func @transform_0(%arg0: i32, %arg1: i32) -> (i32, i32) {
    %c0_i32 = arith.constant 0 : i32
    return %arg0, %arg1 : i32, i32
  }
  func.func @transform_1(%arg0: i32, %arg1: i32) -> (i32, i32) {
    %c0_i32 = arith.constant 0 : i32
    %c0_i32_0 = arith.constant 0 : i32
    return %arg1, %c0_i32 : i32, i32
  }
  func.func @transform_2(%arg0: i32, %arg1: i32) -> (i32, i32) {
    %c0_i32 = arith.constant 0 : i32
    %c0_i32_0 = arith.constant 0 : i32
    %c0_i32_1 = arith.constant 0 : i32
    return %c0_i32, %c0_i32_0 : i32, i32
  }
  func.func @transform_3(%arg0: i32, %arg1: i32) -> (i32, i32, i32) {
    %c0_i32 = arith.constant 0 : i32
    %c0_i32_0 = arith.constant 0 : i32
    %c0_i32_1 = arith.constant 0 : i32
    %c0_i32_2 = arith.constant 0 : i32
    return %c0_i32, %c0_i32_0, %c0_i32_1 : i32, i32, i32
  }
  func.func @transform_4(%arg0: i32, %arg1: i32) -> (i32, i32, i32) {
    %c0_i32 = arith.constant 0 : i32
    %c0_i32_0 = arith.constant 0 : i32
    %c0_i32_1 = arith.constant 0 : i32
    %c0_i32_2 = arith.constant 0 : i32
    return %c0_i32, %c0_i32_0, %c0_i32_1 : i32, i32, i32
  }
  func.func @transform_5(%arg0: i32, %arg1: i32) -> (i32, i32) {
    %c0_i32 = arith.constant 0 : i32
    %c0_i32_0 = arith.constant 0 : i32
    %c0_i32_1 = arith.constant 0 : i32
    return %c0_i32, %c0_i32_0 : i32, i32
  }
  func.func @transform_6(%arg0: i32, %arg1: i32) -> (i32, i32) {
    %c0_i32 = arith.constant 0 : i32
    %c0_i32_0 = arith.constant 0 : i32
    %c0_i32_1 = arith.constant 0 : i32
    return %c0_i32, %c0_i32_0 : i32, i32
  }
  func.func @transform_7(%arg0: i32, %arg1: i32) -> (i32, i32) {
    %c0_i32 = arith.constant 0 : i32
    %c0_i32_0 = arith.constant 0 : i32
    return %arg0, %c0_i32 : i32, i32
  }
}

</mosaic_0001>

<bundles_post_ra>
// kernel: tpu_custom_call.1
= control target key start
LH: loop header
LB: loop body
LE: loop exit
PB: predicated region body
PF: predicated region fallthrough
CT: control target
= control target key end

     0   :  { %12 = vsyncpa [#allocation4], 0  ;;  %s1687_s0 = inlined_call_operand.hbm [shape: bf16[16,768], index: 0, kind: input, shape index: {}]   ;;  %s1688_s1 = inlined_call_operand.hbm [shape: bf16[768,128], index: 1, kind: input, shape index: {}]   ;;  %s1689_s2 = inlined_call_operand.hbm [shape: f32[1,128], index: 2, kind: input, shape index: {}]   ;;  %s1690_s3 = inlined_call_operand.hbm [shape: bf16[3,128,128], index: 3, kind: input, shape index: {}]   ;;  %s1691_s4 = inlined_call_operand.vmem [shape: f32[3,1,128], index: 4, kind: input, shape index: {}]   ;;  %s1692_s5 = inlined_call_operand.hbm [shape: bf16[128,128], index: 5, kind: input, shape index: {}]   ;;  %s1693_s6 = inlined_call_operand.vmem [shape: f32[1,128], index: 6, kind: input, shape index: {}]   ;;  %s1694_s7 = inlined_call_operand.hbm [shape: f32[16,128], index: 7, kind: output, shape index: {}]  }
   0x1   :  { %13 = vsyncpa [#allocation7], 0 }
   0x2   :  { %14 = vsyncpa [#allocation10], 0  ;;  %s33_s26 = sshll.u32 %s1688_s1, 4  ;;  %s34_s26 = int_to_ptr.hbm [resolvable:$true] %s33_s26 }
   0x3   :  { %15 = vsyncpa [#allocation5], 0  ;;  %s1596_s27 = smov [#allocation6]   ;;  %s57_s8 = sshll.u32 %s1690_s3, 4  ;;  %s58_s8 = int_to_ptr.hbm [resolvable:$true] %s57_s8 }
   0x4   :  { %s35_s28 = sshll.u32 %s1596_s27, 4  ;;  %s1597_s9 = smov 64   ;;  %s36_s28 = int_to_ptr.vmem [resolvable:$true] %s35_s28 }
   0x5   :  { %s1598_s10 = smov 4   ;;  %s1599_s11 = smov [#allocation9]  }
   0x6   :  { %41 = dma.hbm_to_vmem [thread:$0]  %s34_s26, 6144, %s36_s28, [#allocation7], %s1597_s9, %s1597_s9, %s1598_s10  }
   0x7   :  { %s59_s12 = sshll.u32 %s1599_s11, 4  ;;  %s20_s14 = sshll.u32 %s1687_s0, 4  ;;  %s60_s12 = int_to_ptr.vmem [resolvable:$true] %s59_s12  ;;  %s21_s14 = int_to_ptr.hbm [resolvable:$true] %s20_s14 }
   0x8   :  { %65 = dma.hbm_to_vmem [thread:$0]  %s58_s8, 3072, %s60_s12, [#allocation10], %s1597_s9, %s1597_s9, %s1598_s10  }
   0x9   :  { %s1600_s3 = smov [#allocation3]   ;;  %s47_s18 = sshll.u32 %s1689_s2, 4  ;;  %s48_s18 = int_to_ptr.hbm [resolvable:$true] %s47_s18 }
   0xa   :  { %s22_s15 = sshll.u32 %s1600_s3, 4  ;;  %s1601_s19 = smov 384   ;;  %s23_s15 = int_to_ptr.vmem [resolvable:$true] %s22_s15 }
   0xb   :  { %s1602_s20 = smov 24   ;;  %s1603_s21 = smov [#allocation8]  }
   0xc   :  { %28 = dma.hbm_to_vmem [thread:$0]  %s21_s14, 768, %s23_s15, [#allocation4], %s1601_s19, %s1601_s19, %s1602_s20  }
   0xd   :  { %s49_s22 = sshll.u32 %s1603_s21, 4  ;;  %s72_s24 = sshll.u32 %s1692_s5, 4  ;;  %s50_s22 = int_to_ptr.vmem [resolvable:$true] %s49_s22  ;;  %s73_s24 = int_to_ptr.hbm [resolvable:$true] %s72_s24 }
   0xe   :  { %52 = dma.hbm_to_vmem [thread:$0]  %s48_s18, 16, %s50_s22, [#allocation7]  }
   0xf   :  { %s1604_s25 = smov [#allocation11]  }
  0x10   :  { %s74_s26 = sshll.u32 %s1604_s25, 4  ;;  %s75_s26 = int_to_ptr.vmem [resolvable:$true] %s74_s26 }
  0x11   :  { %80 = dma.hbm_to_vmem [thread:$0]  %s73_s24, 1024, %s75_s26, [#allocation10], %s1597_s9, %s1597_s9, %s1598_s10  }
  0x12   :  { %1588 = dma.done.wait [#allocation4], 768  }
  0x13   :  { %1589 = vsyncadd [#allocation4], 4294966528 }
  0x14   :  { %1590 = dma.done.wait [#allocation7], 6160  }
  0x15   :  { %1591 = vsyncadd [#allocation7], 4294961136 }
  0x16   :  { %1592 = dma.done.wait [#allocation10], 4096  }
  0x17   :  { %1593 = vsyncadd [#allocation10], 4294963200  ;;  %v1354_v0 = vld [vmem:[#allocation6 + $0x38] sm:$0xff]  ;;  %v1353_v4 = vld [vmem:[#allocation6 + $0x30] sm:$0xff]  ;;  %s1605_s10 = smov [#allocation12]   ;;  %s1606_s1 = smov 128  }
  0x18   :  { %v1362_v1 = vld [vmem:[#allocation6 + $0x78] sm:$0xff]  ;;  %535 = vmatpush.bf16.msra.mxu0 %v1354_v0  ;;  %v1361_v5 = vld [vmem:[#allocation6 + $0x70] sm:$0xff]  ;;  %v1352_v8 = vld [vmem:[#allocation6 + $0x28] sm:$0xff]  ;;  %s978_s11 = sshll.u32 %s1605_s10, 4  ;;  %s1607_s14 = smov 8   ;;  %s979_s11 = int_to_ptr.vmem [resolvable:$true] %s978_s11 }
  0x19   :  { %v1370_v2 = vld [vmem:[#allocation6 + $0xb8] sm:$0xff]  ;;  %549 = vmatpush.bf16.msra.mxu1 %v1362_v1  ;;  %v1369_v6 = vld [vmem:[#allocation6 + $0xb0] sm:$0xff]  ;;  %v1360_v9 = vld [vmem:[#allocation6 + $0x68] sm:$0xff] }
  0x1a   :  { %v1378_v3 = vld [vmem:[#allocation6 + $0xf8] sm:$0xff]  ;;  %563 = vmatpush.bf16.msra.mxu2 %v1370_v2  ;;  %v1377_v7 = vld [vmem:[#allocation6 + $0xf0] sm:$0xff]  ;;  %v1368_v10 = vld [vmem:[#allocation6 + $0xa8] sm:$0xff] }
  0x1b   :  { %577 = vmatpush.bf16.msra.mxu3 %v1378_v3  ;;  %v1376_v11 = vld [vmem:[#allocation6 + $0xe8] sm:$0xff]  ;;  %v1351_v12 = vld [vmem:[#allocation6 + $0x20] sm:$0xff]  ;;  %v1350_v16 = vld [vmem:[#allocation6 + $0x18] sm:$0xff] }
  0x1c   :  { %536 = vmatpush.bf16.msra.mxu0 %v1353_v4  ;;  %v1359_v13 = vld [vmem:[#allocation6 + $0x60] sm:$0xff]  ;;  %v1358_v17 = vld [vmem:[#allocation6 + $0x58] sm:$0xff]  ;;  %v1349_v20 = vld [vmem:[#allocation6 + $0x10] sm:$0xff] }
  0x1d   :  { %550 = vmatpush.bf16.msra.mxu1 %v1361_v5  ;;  %v1367_v14 = vld [vmem:[#allocation6 + $0xa0] sm:$0xff]  ;;  %v1366_v18 = vld [vmem:[#allocation6 + $0x98] sm:$0xff]  ;;  %v1357_v21 = vld [vmem:[#allocation6 + $0x50] sm:$0xff] }
  0x1e   :  { %564 = vmatpush.bf16.msra.mxu2 %v1369_v6  ;;  %v1375_v15 = vld [vmem:[#allocation6 + $0xe0] sm:$0xff]  ;;  %v1374_v19 = vld [vmem:[#allocation6 + $0xd8] sm:$0xff]  ;;  %v1365_v22 = vld [vmem:[#allocation6 + $0x90] sm:$0xff] }
  0x1f   :  { %578 = vmatpush.bf16.msra.mxu3 %v1377_v7  ;;  %v1373_v23 = vld [vmem:[#allocation6 + $0xd0] sm:$0xff]  ;;  %v1348_v24 = vld [vmem:[#allocation6 + $0x8] sm:$0xff]  ;;  %v1347_v28 = vld [vmem:[#allocation6] sm:$0xff] }
  0x20   :  { %537 = vmatpush.bf16.msra.mxu0 %v1352_v8  ;;  %v1356_v25 = vld [vmem:[#allocation6 + $0x48] sm:$0xff]  ;;  %v1355_v29 = vld [vmem:[#allocation6 + $0x40] sm:$0xff]  ;;  %v1386_v31 = vld [vmem:[#allocation6 + $0x138] sm:$0xff] }
  0x21   :  { %551 = vmatpush.bf16.msra.mxu1 %v1360_v9  ;;  %v1364_v26 = vld [vmem:[#allocation6 + $0x88] sm:$0xff]  ;;  %v1363_v30 = vld [vmem:[#allocation6 + $0x80] sm:$0xff]  ;;  %v997_v32 = vld [vmem:[#allocation3] sm:$0xf] }
  0x22   :  { %565 = vmatpush.bf16.msra.mxu2 %v1368_v10  ;;  %v1372_v27 = vld [vmem:[#allocation6 + $0xc8] sm:$0xff]  ;;  %v1341_v34 = vld [vmem:[#allocation3 + $0x4] sm:$0xf]  ;;  %v1394_v36 = vld [vmem:[#allocation6 + $0x178] sm:$0xff] }
  0x23   :  { %579 = vmatpush.bf16.msra.mxu3 %v1376_v11  ;;  %v1344_v33 = vld [vmem:[#allocation3 + $0x14] sm:$0xf0]  ;;  %v999_v35 = vld [vmem:[#allocation3 + $0x18] sm:$0xf0]  ;;  %v1005_v37 = vld [vmem:[#allocation3 + $0x8] sm:$0xf] }
  0x24   :  { %538 = vmatpush.bf16.msra.mxu0 %v1351_v12  ;;  %v1345_v38 = vld [vmem:[#allocation3 + $0x1c] sm:$0xf0]  ;;  %v1371_v39 = vld [vmem:[#allocation6 + $0xc0] sm:$0xff]  ;;  %v1342_v40 = vld [vmem:[#allocation3 + $0xc] sm:$0xf]  ;;  %v998_v42 = vor.u32 %v1344_v33, %v997_v32  ;;  %v1002_v43 = vor.u32 %v1341_v34, %v999_v35 }
  0x25   :  { %552 = vmatpush.bf16.msra.mxu1 %v1359_v13  ;;  %v1007_v41 = vld [vmem:[#allocation3 + $0x20] sm:$0xf0]  ;;  %v1006_v44 = vor.u32 %v1345_v38, %v1005_v37  ;;  %v1384_v48 = vld [vmem:[#allocation6 + $0x128] sm:$0xff]  ;;  %v1383_v50 = vld [vmem:[#allocation6 + $0x120] sm:$0xff] }
  0x26   :  { %566 = vmatpush.bf16.msra.mxu2 %v1367_v14  ;;  %v1385_v45 = vld [vmem:[#allocation6 + $0x130] sm:$0xff]  ;;  %v1010_v46 = vor.u32 %v1342_v40, %v1007_v41  ;;  %v1392_v49 = vld [vmem:[#allocation6 + $0x168] sm:$0xff]  ;;  %v1391_v51 = vld [vmem:[#allocation6 + $0x160] sm:$0xff] }
  0x27   :  { %580 = vmatpush.bf16.msra.mxu3 %v1375_v15  ;;  %v1393_v47 = vld [vmem:[#allocation6 + $0x170] sm:$0xff]  ;;  %v1382_v52 = vld [vmem:[#allocation6 + $0x118] sm:$0xff]  ;;  %v1380_v56 = vld [vmem:[#allocation6 + $0x108] sm:$0xff] }
  0x28   :  { %539 = vmatpush.bf16.msra.mxu0 %v1350_v16  ;;  %v1390_v53 = vld [vmem:[#allocation6 + $0x158] sm:$0xff]  ;;  %v1381_v54 = vld [vmem:[#allocation6 + $0x110] sm:$0xff]  ;;  %v1388_v57 = vld [vmem:[#allocation6 + $0x148] sm:$0xff] }
  0x29   :  { %553 = vmatpush.bf16.msra.mxu1 %v1358_v17  ;;  %v1389_v55 = vld [vmem:[#allocation6 + $0x150] sm:$0xff]  ;;  %v1379_v58 = vld [vmem:[#allocation6 + $0x100] sm:$0xff]  ;;  %v1346_v60 = vld [vmem:[#allocation3 + $0x24] sm:$0xf0] }
  0x2a   :  { %567 = vmatpush.bf16.msra.mxu2 %v1366_v18  ;;  %v1013_v59 = vld [vmem:[#allocation3 + $0x10] sm:$0xf]  ;;  %v1343_v62 = vld [vmem:[#allocation3 + $0x14] sm:$0xf]  ;;  %v1015_v63 = vld [vmem:[#allocation3 + $0x28] sm:$0xf0] }
  0x2b   :  { %581 = vmatpush.bf16.msra.mxu3 %v1374_v19  ;;  %v1387_v61 = vld [vmem:[#allocation6 + $0x140] sm:$0xff]  ;;  %v1014_v0 = vor.u32 %v1346_v60, %v1013_v59  ;;  %v1018_v1 = vor.u32 %v1343_v62, %v1015_v63  ;;  %v1401_v3 = vld [vmem:[#allocation9 + $0x30] sm:$0xff]  ;;  %v1400_v4 = vld [vmem:[#allocation9 + $0x28] sm:$0xff] }
  0x2c   :  { %540 = vmatpush.bf16.msra.mxu0 %v1349_v20  ;;  %v1402_v2 = vld [vmem:[#allocation9 + $0x38] sm:$0xff]  ;;  %v1399_v5 = vld [vmem:[#allocation9 + $0x20] sm:$0xff]  ;;  %v1397_v7 = vld [vmem:[#allocation9 + $0x10] sm:$0xff] }
  0x2d   :  { %554 = vmatpush.bf16.msra.mxu1 %v1357_v21  ;;  %v1398_v6 = vld [vmem:[#allocation9 + $0x18] sm:$0xff]  ;;  %v1396_v8 = vld [vmem:[#allocation9 + $0x8] sm:$0xff]  ;;  %v1395_v11 = vld [vmem:[#allocation9] sm:$0xff] }
  0x2e   :  { %568 = vmatpush.bf16.msra.mxu2 %v1365_v22  ;;  %v1410_v12 = vld [vmem:[#allocation9 + $0x78] sm:$0xff]  ;;  %v1409_v13 = vld [vmem:[#allocation9 + $0x70] sm:$0xff]  ;;  %v1408_v18 = vld [vmem:[#allocation9 + $0x68] sm:$0xff] }
  0x2f   :  { %582 = vmatpush.bf16.msra.mxu3 %v1373_v23  ;;  %v1407_v21 = vld [vmem:[#allocation9 + $0x60] sm:$0xff]  ;;  %v1413_v59 = vld [vmem:[#allocation9 + $0x90] sm:$0xff]  ;;  %v1412_v60 = vld [vmem:[#allocation9 + $0x88] sm:$0xff] }
  0x30   :  { %541 = vmatpush.bf16.msra.mxu0 %v1348_v24  ;;  %v1426_v62 = vld [vmem:[#allocation11 + $0x38] sm:$0xff]  ;;  %v1425_v63 = vld [vmem:[#allocation11 + $0x30] sm:$0xff] }
  0x31   :  { %555 = vmatpush.bf16.msra.mxu1 %v1356_v25 }
  0x32   :  { %569 = vmatpush.bf16.msra.mxu2 %v1364_v26 }
  0x33   :  { %583 = vmatpush.bf16.msra.mxu3 %v1372_v27 }
  0x34   :  { %542 = vmatpush.bf16.msra.mxu0 %v1347_v28 }
  0x35   :  { %556 = vmatpush.bf16.msra.mxu1 %v1355_v29 }
  0x36   :  { %570 = vmatpush.bf16.msra.mxu2 %v1363_v30 }
  0x37   :  { %584 = vmatpush.bf16.msra.mxu3 %v1371_v39  ;;  %543 = vmatmul.bf16.vlgmr.msra.gmra.mxu0 %v998_v42  ;;  %v1406_v42 = vld [vmem:[#allocation9 + $0x58] sm:$0xff] }
  0x38   :  { %591 = vmatpush.bf16.msrb.mxu0 %v1386_v31  ;;  %557 = vmatmul.bf16.vlgmr.msra.gmra.mxu1 %v1002_v43  ;;  %v1439_v31 = vld [vmem:[#allocation8] ss:$0 sm:$0xff]  ;;  %v1405_v43 = vld [vmem:[#allocation9 + $0x50] sm:$0xff] }
  0x39   :  { %605 = vmatpush.bf16.msrb.mxu1 %v1394_v36  ;;  %571 = vmatmul.bf16.vlgmr.msra.gmra.mxu2 %v1006_v44  ;;  %v1404_v44 = vld [vmem:[#allocation9 + $0x48] sm:$0xff] }
  0x3a   :  { %585 = vmatmul.bf16.vlgmr.msra.gmra.mxu3 %v1010_v46  ;;  %699 = vmatpush.bf16.msrb.mxu2 %v1402_v2  ;;  %v1418_v46 = vld [vmem:[#allocation9 + $0xb8] sm:$0xff] }
  0x3b   :  { %786 = vmatpush.bf16.msrb.mxu3 %v1410_v12  ;;  %v1420_v12 = vld [vmem:[#allocation11 + $0x8] sm:$0xff] }
  0x3c   :  { %592 = vmatpush.bf16.msrb.mxu0 %v1385_v45  ;;  %v1403_v45 = vld [vmem:[#allocation9 + $0x40] sm:$0xff] }
  0x3d   :  { %606 = vmatpush.bf16.msrb.mxu1 %v1393_v47  ;;  %v1417_v47 = vld [vmem:[#allocation9 + $0xb0] sm:$0xff] }
  0x3e   :  { %700 = vmatpush.bf16.msrb.mxu2 %v1401_v3  ;;  %v1441_v3 = vld [vmem:[%s1691_s4 + $0x1] ss:$0 sm:$0xff] }
  0x3f   :  { %787 = vmatpush.bf16.msrb.mxu3 %v1409_v13  ;;  %v1419_v13 = vld [vmem:[#allocation11] sm:$0xff] }
  0x40   :  { %593 = vmatpush.bf16.msrb.mxu0 %v1384_v48  ;;  %v1416_v48 = vld [vmem:[#allocation9 + $0xa8] sm:$0xff] }
  0x41   :  { %607 = vmatpush.bf16.msrb.mxu1 %v1392_v49  ;;  %v1415_v49 = vld [vmem:[#allocation9 + $0xa0] sm:$0xff] }
  0x42   :  { %701 = vmatpush.bf16.msrb.mxu2 %v1400_v4 }
  0x43   :  { %788 = vmatpush.bf16.msrb.mxu3 %v1408_v18 }
  0x44   :  { %594 = vmatpush.bf16.msrb.mxu0 %v1383_v50 }
  0x45   :  { %608 = vmatpush.bf16.msrb.mxu1 %v1391_v51  ;;  %v1440_v51 = vld [vmem:[%s1691_s4] ss:$0 sm:$0xff] }
  0x46   :  { %702 = vmatpush.bf16.msrb.mxu2 %v1399_v5 }
  0x47   :  { %789 = vmatpush.bf16.msrb.mxu3 %v1407_v21 }
  0x48   :  { %595 = vmatpush.bf16.msrb.mxu0 %v1382_v52 }
  0x49   :  { %609 = vmatpush.bf16.msrb.mxu1 %v1390_v53 }
  0x4a   :  { %703 = vmatpush.bf16.msrb.mxu2 %v1398_v6 }
  0x4b   :  { %790 = vmatpush.bf16.msrb.mxu3 %v1406_v42 }
  0x4c   :  { %596 = vmatpush.bf16.msrb.mxu0 %v1381_v54 }
  0x4d   :  { %610 = vmatpush.bf16.msrb.mxu1 %v1389_v55 }
  0x4e   :  { %704 = vmatpush.bf16.msrb.mxu2 %v1397_v7 }
  0x4f   :  { %791 = vmatpush.bf16.msrb.mxu3 %v1405_v43 }
  0x50   :  { %597 = vmatpush.bf16.msrb.mxu0 %v1380_v56 }
  0x51   :  { %611 = vmatpush.bf16.msrb.mxu1 %v1388_v57 }
  0x52   :  { %705 = vmatpush.bf16.msrb.mxu2 %v1396_v8 }
  0x53   :  { %792 = vmatpush.bf16.msrb.mxu3 %v1404_v44 }
  0x54   :  { %598 = vmatpush.bf16.msrb.mxu0 %v1379_v58  ;;  %v1414_v58 = vld [vmem:[#allocation9 + $0x98] sm:$0xff] }
  0x55   :  { %612 = vmatpush.bf16.msrb.mxu1 %v1387_v61  ;;  %v1411_v61 = vld [vmem:[#allocation9 + $0x80] sm:$0xff] }
  0x56   :  { %706 = vmatpush.bf16.msrb.mxu2 %v1395_v11  ;;  %v1421_v11 = vld [vmem:[#allocation11 + $0x10] sm:$0xff] }
  0x57   :  { %599 = vmatmul.bf16.vlgmr.msrb.gmra.mxu0 %v1014_v0  ;;  %793 = vmatpush.bf16.msrb.mxu3 %v1403_v45  ;;  %v1424_v0 = vld [vmem:[#allocation11 + $0x28] sm:$0xff] }
  0x58   :  { %613 = vmatmul.bf16.vlgmr.msrb.gmra.mxu1 %v1018_v1  ;;  %873 = vmatpush.bf16.msra.mxu0 %v1418_v46  ;;  %v1423_v1 = vld [vmem:[#allocation11 + $0x20] sm:$0xff] }
  0x59   :  { %958 = vmatpush.bf16.msra.mxu1 %v1426_v62 }
  0x5c   :  { %874 = vmatpush.bf16.msra.mxu0 %v1417_v47 }
  0x5d   :  { %959 = vmatpush.bf16.msra.mxu1 %v1425_v63 }
  0x60   :  { %875 = vmatpush.bf16.msra.mxu0 %v1416_v48 }
  0x61   :  { %960 = vmatpush.bf16.msra.mxu1 %v1424_v0 }
  0x64   :  { %876 = vmatpush.bf16.msra.mxu0 %v1415_v49 }
  0x65   :  { %961 = vmatpush.bf16.msra.mxu1 %v1423_v1 }
  0x68   :  { %877 = vmatpush.bf16.msra.mxu0 %v1414_v58 }
  0x6c   :  { %878 = vmatpush.bf16.msra.mxu0 %v1413_v59 }
  0x70   :  { %879 = vmatpush.bf16.msra.mxu0 %v1412_v60 }
  0x74   :  { %880 = vmatpush.bf16.msra.mxu0 %v1411_v61 }
  0xb4   :  { %v544_v9 = vpop.f32.mrf.mxu0 }
  0xb5   :  { %v558_v10 = vpop.f32.mrf.mxu1 }
  0xb6   :  { %v559_v16 = vadd.f32 %v558_v10, %v544_v9  ;;  %v1422_v10 = vld [vmem:[#allocation11 + $0x18] sm:$0xff] }
  0xb7   :  { %962 = vmatpush.bf16.msra.mxu1 %v1422_v10 }
  0xbb   :  { %963 = vmatpush.bf16.msra.mxu1 %v1421_v11 }
  0xbc   :  { %v572_v14 = vpop.f32.mrf.mxu2  ;;  %v546_v15 = vpop.f32.mrf.mxu0 }
  0xbd   :  { %v560_v17 = vpop.f32.mrf.mxu1  ;;  %v586_v19 = vpop.f32.mrf.mxu3  ;;  %v573_v20 = vadd.f32 %v572_v14, %v559_v16 }
  0xbe   :  { %v561_v22 = vadd.f32 %v560_v17, %v546_v15  ;;  %v1442_v15 = vld [vmem:[%s1691_s4 + $0x2] ss:$0 sm:$0xff]  ;;  %s980_s4 = sshll.u32 %s1694_s7, 4  ;;  %s981_s4 = int_to_ptr.hbm [resolvable:$true] %s980_s4 }
  0xbf   :  { %v587_v25 = vadd.f32 %v586_v19, %v573_v20  ;;  %964 = vmatpush.bf16.msra.mxu1 %v1420_v12 }
  0xc3   :  { %965 = vmatpush.bf16.msra.mxu1 %v1419_v13 }
  0xc4   :  { %v574_v23 = vpop.f32.mrf.mxu2 }
  0xc5   :  { %v575_v27 = vadd.f32 %v574_v23, %v561_v22  ;;  %v588_v29 = vpop.f32.mrf.mxu3  ;;  %v1443_v22 = vld [vmem:[%s1693_s6] ss:$0 sm:$0xff] }
  0xc7   :  { %v589_v30 = vadd.f32 %v588_v29, %v575_v27 }
  0xd4   :  { %v600_v24 = vpop.f32.mrf.mxu0 }
  0xd5   :  { %v614_v26 = vpop.f32.mrf.mxu1  ;;  %v601_v28 = vadd.f32 %v600_v24, %v587_v25 }
  0xd7   :  { %v615_v32 = vadd.f32 %v614_v26, %v601_v28 }
  0xd9   :  { %v619_v36 = vadd.f32 %v1439_v31, %v615_v32 }
  0xdb   :  { %v628_v39 = vmax.f32 %v619_v36, 0.0 }
  0xdc   :  { %v602_v33 = vpop.f32.mrf.mxu0 }
  0xdd   :  { %v603_v34 = vadd.f32 %v602_v33, %v589_v30  ;;  %v616_v35 = vpop.f32.mrf.mxu1 }
  0xdf   :  { %v617_v37 = vadd.f32 %v616_v35, %v603_v34 }
  0xe1   :  { %v620_v38 = vadd.f32 %v1439_v31, %v617_v37 }
  0xe3   :  { %v629_v40 = vmax.f32 %v620_v38, 0.0 }
  0xe5   :  { %v630_v41 = vpack.c.bf16 %v629_v40, %v628_v39 }
  0xe7   :  { %707 = vmatmul.bf16.vlgmr.msrb.gmra.mxu2 %v630_v41 }
 0x16a   :  { %v708_v50 = vpop.f32.mrf.mxu2 }
 0x16b   :  { %v709_v52 = vadd.f32 %v1440_v51, %v708_v50 }
 0x16d   :  { %v713_v55 = vmax.f32 %v709_v52, 0.0 }
 0x172   :  { %v710_v53 = vpop.f32.mrf.mxu2 }
 0x173   :  { %v711_v54 = vadd.f32 %v1440_v51, %v710_v53 }
 0x175   :  { %v714_v56 = vmax.f32 %v711_v54, 0.0 }
 0x177   :  { %v715_v57 = vpack.c.bf16 %v714_v56, %v713_v55 }
 0x179   :  { %794 = vmatmul.bf16.vlgmr.msrb.gmra.mxu3 %v715_v57 }
 0x1fc   :  { %v795_v2 = vpop.f32.mrf.mxu3 }
 0x1fd   :  { %v796_v4 = vadd.f32 %v1441_v3, %v795_v2 }
 0x1ff   :  { %v800_v7 = vmax.f32 %v796_v4, 0.0 }
 0x204   :  { %v797_v5 = vpop.f32.mrf.mxu3 }
 0x205   :  { %v798_v6 = vadd.f32 %v1441_v3, %v797_v5 }
 0x207   :  { %v801_v8 = vmax.f32 %v798_v6, 0.0 }
 0x209   :  { %v802_v9 = vpack.c.bf16 %v801_v8, %v800_v7 }
 0x20b   :  { %881 = vmatmul.bf16.vlgmr.msra.gmra.mxu0 %v802_v9 }
 0x288   :  { %v882_v14 = vpop.f32.mrf.mxu0 }
 0x289   :  { %v883_v16 = vadd.f32 %v1442_v15, %v882_v14 }
 0x28b   :  { %v887_v19 = vmax.f32 %v883_v16, 0.0 }
 0x290   :  { %v884_v17 = vpop.f32.mrf.mxu0 }
 0x291   :  { %v885_v18 = vadd.f32 %v1442_v15, %v884_v17 }
 0x293   :  { %v888_v20 = vmax.f32 %v885_v18, 0.0 }
 0x295   :  { %v889_v21 = vpack.c.bf16 %v888_v20, %v887_v19 }
 0x297   :  { %966 = vmatmul.bf16.vlgmr.msra.gmra.mxu1 %v889_v21 }
 0x314   :  { %v967_v23 = vpop.f32.mrf.mxu1 }
 0x315   :  { %v968_v24 = vadd.f32 %v1443_v22, %v967_v23 }
 0x317   :  { %972 = vst [vmem:[#allocation12] sm:$0xff] %v968_v24 }
 0x31c   :  { %v969_v25 = vpop.f32.mrf.mxu1 }
 0x31d   :  { %v970_v26 = vadd.f32 %v1443_v22, %v969_v25 }
 0x31f   :  { %973 = vst [vmem:[#allocation12 + $0x8] sm:$0xff] %v970_v26 }
 0x320   :  { %986 = dma.vmem_to_hbm [thread:$0]  %s979_s11, 256, %s981_s4, [#allocation5], %s1606_s1, %s1606_s1, %s1607_s14  }
 0x321   :  { %1594 = dma.done.wait [#allocation5], 256  }
 0x322   :  { %1595 = vsyncadd [#allocation5], 4294967040 }
 0x323   :  { %991 = vsyncpa [#allocation4], 1 }
 0x324   :  { %992 = vsyncpa [#allocation7], 1 }
 0x325   :  { %993 = vsyncpa [#allocation10], 1 }
 0x326   :  { %994 = vsyncpa [#allocation5], 1 }

</bundles_post_ra>
